<compile_context>
chip_gen: v6e
topology: v6e:2x2x1
jax: 0.10.0
libtpu: 0.0.40
codegen_flags: <defaults>
</compile_context>

<pallas_src>
import functools
import math

import jax
import jax.numpy as jnp
from jax.experimental import pallas as pl
from jax.experimental.pallas import tpu as pltpu


_LANES = 128
# Pad value for logits: sigmoid(_PAD_LOGIT) == 0 and the stable BCE term at
# (x=_PAD_LOGIT, t=0) == 0 exactly, for any float dtype (safe even for f16).
_PAD_LOGIT = -1.0e4


def _soft_dice_kernel(logits_ref, targets_ref, out_ref, acc_ref, *, n, d):
    """Processes one (S, 128) chunk of one sample.

    acc_ref (SMEM f32[8]) layout:
      [0] running sum of BCE terms over all samples/chunks
      [1] running intersection sum for the current sample
      [2] running sigmoid(logits) sum for the current sample
      [3] running targets sum for the current sample
      [4] running sum of per-sample dice scores
    """
    i = pl.program_id(0)             # sample index
    j = pl.program_id(1)             # chunk index (reduction axis, last in grid)
    last_i = pl.num_programs(0) - 1
    last_j = pl.num_programs(1) - 1

    @pl.when(jnp.logical_and(i == 0, j == 0))
    def _init_global():
        acc_ref[0] = jnp.float32(0.0)
        acc_ref[4] = jnp.float32(0.0)

    @pl.when(j == 0)
    def _init_sample():
        acc_ref[1] = jnp.float32(0.0)
        acc_ref[2] = jnp.float32(0.0)
        acc_ref[3] = jnp.float32(0.0)

    x = logits_ref[...].astype(jnp.float32)    # (S, 128)
    t = targets_ref[...].astype(jnp.float32)   # (S, 128)

    # Shared transcendentals: e = exp(-|x|) feeds both BCE and sigmoid.
    e = jnp.exp(-jnp.abs(x))
    r = 1.0 / (1.0 + e)                        # = sigmoid(|x|)  (exact divide)
    probs = jnp.where(x >= 0, r, e * r)        # = sigmoid(x), exact
    # Numerically stable BCE-with-logits: max(x,0) - x*t + log1p(exp(-|x|))
    bce = jnp.maximum(x, 0.0) - x * t + jnp.log1p(e)

    acc_ref[0] += jnp.sum(bce)
    acc_ref[1] += jnp.sum(probs * t)
    acc_ref[2] += jnp.sum(probs)
    acc_ref[3] += jnp.sum(t)

    @pl.when(j == last_j)
    def _finish_sample():
        smooth = jnp.float32(1.0)
        score = 2.0 * (acc_ref[1] + smooth) / (acc_ref[2] + acc_ref[3] + smooth)
        acc_ref[4] += score

    @pl.when(jnp.logical_and(i == last_i, j == last_j))
    def _finalize():
        bce_mean = acc_ref[0] / jnp.float32(n * d)
        dice = jnp.float32(1.0) - acc_ref[4] / jnp.float32(n)
        out_ref[0, 0] = dice + bce_mean


def soft_dice_loss(logits, targets, *, block_rows=2048):
    """logits, targets: (N, C, H, W) arrays (any float/int dtype). Returns f32 scalar."""
    n = logits.shape[0]
    d = math.prod(logits.shape[1:])

    l2 = logits.reshape(n, d)
    t2 = targets.reshape(n, d)

    d_rows = -(-d // _LANES)                  # ceil(d / 128)
    s_rows = min(d_rows, block_rows)          # sublane extent of one chunk
    chunks = -(-d_rows // s_rows)
    d_pad = chunks * s_rows * _LANES

    if d_pad != d:
        pad = d_pad - d
        # Padded elements contribute exactly 0 to every partial sum.
        l2 = jnp.pad(l2, ((0, 0), (0, pad)), constant_values=_PAD_LOGIT)
        t2 = jnp.pad(t2, ((0, 0), (0, pad)), constant_values=0)

    l3 = l2.reshape(n, chunks * s_rows, _LANES)
    t3 = t2.reshape(n, chunks * s_rows, _LANES)

    in_spec = pl.BlockSpec((None, s_rows, _LANES), lambda i, j: (i, j, 0))

    block_bytes = s_rows * _LANES * (l3.dtype.itemsize + t3.dtype.itemsize)
    # 2 pipeline buffers per input + headroom; stays under every chip's scoped
    # VMEM default (16 MiB v5e, 32 MiB v6e/v7x) and v7x's 64 MiB physical VMEM.
    vmem_limit = int(min(32 * 1024 * 1024, max(8 * 1024 * 1024, 4 * block_bytes)))

    total = n * d_pad
    cost = pl.CostEstimate(
        flops=10 * total,
        transcendentals=3 * total,            # exp, log1p, divide per element
        bytes_accessed=total * (l3.dtype.itemsize + t3.dtype.itemsize) + 4,
    )

    kernel = functools.partial(_soft_dice_kernel, n=n, d=d)

    out = pl.pallas_call(
        kernel,
        out_shape=jax.ShapeDtypeStruct((1, 1), jnp.float32),
        grid_spec=pltpu.PrefetchScalarGridSpec(
            num_scalar_prefetch=0,
            grid=(n, chunks),
            in_specs=[in_spec, in_spec],
            out_specs=pl.BlockSpec(
                (1, 1), lambda i, j: (0, 0),
                memory_space=pltpu.MemorySpace.SMEM),
            scratch_shapes=[pltpu.SMEM((8,), jnp.float32)],
        ),
        # Both axes "arbitrary": the SMEM accumulators are carried across the
        # whole grid, so the sample axis must stay on one core.
        # TODO(synk): on v7x, mark the N axis "parallel" with per-core partial
        # accumulators + a combine epilogue to use both TensorCores.
        compiler_params=pltpu.CompilerParams(
            dimension_semantics=("arbitrary", "arbitrary"),
            vmem_limit_bytes=vmem_limit,
        ),
        cost_estimate=cost,
    )(l3, t3)
    return out[0, 0]


def _reference(logits, targets):
    # Pure-JAX reference mirroring the PyTorch forward exactly.
    n = logits.shape[0]
    x = logits.reshape(-1).astype(jnp.float32)
    t = targets.reshape(-1).astype(jnp.float32)
    bce = jnp.mean(jnp.maximum(x, 0.0) - x * t + jnp.log1p(jnp.exp(-jnp.abs(x))))
    m1 = jax.nn.sigmoid(logits.reshape(n, -1).astype(jnp.float32))
    m2 = targets.reshape(n, -1).astype(jnp.float32)
    score = 2.0 * (jnp.sum(m1 * m2, axis=1) + 1.0) / (jnp.sum(m1, axis=1) + jnp.sum(m2, axis=1) + 1.0)
    return (1.0 - jnp.sum(score) / n) + bce


if __name__ == "__main__":
    key = jax.random.PRNGKey(0)
    k1, k2, k3, k4 = jax.random.split(key, 4)

    # Main case: NCHW, D = 4*16*16 = 1024 (exact multiple of 128 lanes).
    logits = jax.random.normal(k1, (2, 4, 16, 16), dtype=jnp.float32)
    targets = jax.random.bernoulli(k2, p=0.5, shape=(2, 4, 16, 16)).astype(jnp.float32)

    loss = jax.block_until_ready(soft_dice_loss(logits, targets))
    ref = jax.block_until_ready(_reference(logits, targets))
    assert jnp.allclose(loss, ref, rtol=1e-5, atol=1e-5), (loss, ref)

    # Tail case: D = 3*10*10 = 300 exercises the lane-padding path.
    logits2 = jax.random.normal(k3, (2, 3, 10, 10), dtype=jnp.float32)
    targets2 = jax.random.bernoulli(k4, p=0.5, shape=(2, 3, 10, 10)).astype(jnp.float32)

    loss2 = jax.block_until_ready(soft_dice_loss(logits2, targets2))
    ref2 = jax.block_until_ready(_reference(logits2, targets2))
    assert jnp.allclose(loss2, ref2, rtol=1e-5, atol=1e-5), (loss2, ref2)

    print("KERNEL_OK")
</pallas_src>

<mosaic_0001>
module attributes {stable_mosaic.version = 11 : i64} {
  func.func @_soft_dice_kernel(%arg0: i32, %arg1: i32, %arg2: memref<1x8x128xf32, #tpu.memory_space<vmem>>, %arg3: memref<1x8x128xf32, #tpu.memory_space<vmem>>, %arg4: memref<1x1xf32, #tpu.memory_space<smem>>, %arg5: memref<8xf32, #tpu.memory_space<smem>>) attributes {dimension_semantics = [#tpu.dimension_semantics<arbitrary>, #tpu.dimension_semantics<arbitrary>], iteration_bounds = array<i64: 2, 1>, scalar_prefetch = 0 : i64, scratch_operands = 1 : i64, tpu.core_type = #tpu.core_type<tc>, window_params = [{transform_indices = @transform_0, window_bounds = array<i64: 1, 8, 128>}, {transform_indices = @transform_1, window_bounds = array<i64: 1, 8, 128>}, {transform_indices = @transform_2, window_bounds = array<i64: 1, 1>}]} {
    %c0_i32 = arith.constant 0 : i32
    %0 = arith.cmpi eq, %arg0, %c0_i32 : i32
    %c0_i32_0 = arith.constant 0 : i32
    %1 = arith.cmpi eq, %arg1, %c0_i32_0 : i32
    %2 = arith.andi %0, %1 : i1
    %3 = arith.extui %2 : i1 to i32
    %c0_i32_1 = arith.constant 0 : i32
    %4 = arith.cmpi ne, %3, %c0_i32_1 : i32
    scf.if %4 {
      %cst_26 = arith.constant 0.000000e+00 : f32
      %c0_27 = arith.constant 0 : index
      %67 = memref.load %arg5[%c0_27] : memref<8xf32, #tpu.memory_space<smem>>
      memref.store %cst_26, %arg5[%c0_27] : memref<8xf32, #tpu.memory_space<smem>>
      %cst_28 = arith.constant 0.000000e+00 : f32
      %c4 = arith.constant 4 : index
      %68 = memref.load %arg5[%c4] : memref<8xf32, #tpu.memory_space<smem>>
      memref.store %cst_28, %arg5[%c4] : memref<8xf32, #tpu.memory_space<smem>>
    } else {
    }
    %c0_i32_2 = arith.constant 0 : i32
    %5 = arith.cmpi eq, %arg1, %c0_i32_2 : i32
    %6 = arith.extui %5 : i1 to i32
    %c0_i32_3 = arith.constant 0 : i32
    %7 = arith.cmpi ne, %6, %c0_i32_3 : i32
    scf.if %7 {
      %cst_26 = arith.constant 0.000000e+00 : f32
      %c1_27 = arith.constant 1 : index
      %67 = memref.load %arg5[%c1_27] : memref<8xf32, #tpu.memory_space<smem>>
      memref.store %cst_26, %arg5[%c1_27] : memref<8xf32, #tpu.memory_space<smem>>
      %cst_28 = arith.constant 0.000000e+00 : f32
      %c2_29 = arith.constant 2 : index
      %68 = memref.load %arg5[%c2_29] : memref<8xf32, #tpu.memory_space<smem>>
      memref.store %cst_28, %arg5[%c2_29] : memref<8xf32, #tpu.memory_space<smem>>
      %cst_30 = arith.constant 0.000000e+00 : f32
      %c3_31 = arith.constant 3 : index
      %69 = memref.load %arg5[%c3_31] : memref<8xf32, #tpu.memory_space<smem>>
      memref.store %cst_30, %arg5[%c3_31] : memref<8xf32, #tpu.memory_space<smem>>
    } else {
    }
    %c0 = arith.constant 0 : index
    %c0_4 = arith.constant 0 : index
    %c0_5 = arith.constant 0 : index
    %8 = vector.load %arg2[%c0, %c0_4, %c0_5] : memref<1x8x128xf32, #tpu.memory_space<vmem>>, vector<1x8x128xf32>
    %9 = vector.shape_cast %8 : vector<1x8x128xf32> to vector<8x128xf32>
    %c0_6 = arith.constant 0 : index
    %c0_7 = arith.constant 0 : index
    %c0_8 = arith.constant 0 : index
    %10 = vector.load %arg3[%c0_6, %c0_7, %c0_8] : memref<1x8x128xf32, #tpu.memory_space<vmem>>, vector<1x8x128xf32>
    %11 = vector.shape_cast %10 : vector<1x8x128xf32> to vector<8x128xf32>
    %12 = math.absf %9 : vector<8x128xf32>
    %cst = arith.constant 0.000000e+00 : f32
    %13 = vector.broadcast %cst : f32 to vector<8x128xf32>
    %14 = arith.subf %13, %12 : vector<8x128xf32>
    %15 = math.exp %14 : vector<8x128xf32>
    %cst_9 = arith.constant 1.000000e+00 : f32
    %16 = vector.broadcast %cst_9 : f32 to vector<8x128xf32>
    %17 = arith.addf %16, %15 : vector<8x128xf32>
    %cst_10 = arith.constant 1.000000e+00 : f32
    %18 = vector.broadcast %cst_10 : f32 to vector<8x128xf32>
    %19 = arith.divf %18, %17 : vector<8x128xf32>
    %cst_11 = arith.constant 0.000000e+00 : f32
    %20 = vector.broadcast %cst_11 : f32 to vector<8x128xf32>
    %21 = arith.cmpf oge, %9, %20 : vector<8x128xf32>
    %22 = arith.mulf %15, %19 : vector<8x128xf32>
    %23 = arith.select %21, %19, %22 : vector<8x128xi1>, vector<8x128xf32>
    %cst_12 = arith.constant 0.000000e+00 : f32
    %24 = vector.broadcast %cst_12 : f32 to vector<8x128xf32>
    %25 = arith.maximumf %9, %24 : vector<8x128xf32>
    %26 = arith.mulf %9, %11 : vector<8x128xf32>
    %27 = arith.subf %25, %26 : vector<8x128xf32>
    %28 = math.log1p %15 : vector<8x128xf32>
    %29 = arith.addf %27, %28 : vector<8x128xf32>
    %c0_13 = arith.constant 0 : index
    %30 = memref.load %arg5[%c0_13] : memref<8xf32, #tpu.memory_space<smem>>
    %31 = vector.shape_cast %29 : vector<8x128xf32> to vector<1x8x128xf32>
    %cst_14 = arith.constant dense<0.000000e+00> : vector<1xf32>
    %32 = vector.multi_reduction <add>, %31, %cst_14 [1, 2] : vector<1x8x128xf32> to vector<1xf32>
    %33 = vector.shape_cast %32 : vector<1xf32> to vector<1x1x1xf32>
    %34 = vector.extract %33[0, 0, 0] : f32 from vector<1x1x1xf32>
    %35 = arith.addf %30, %34 : f32
    %c0_15 = arith.constant 0 : index
    %36 = memref.load %arg5[%c0_15] : memref<8xf32, #tpu.memory_space<smem>>
    memref.store %35, %arg5[%c0_15] : memref<8xf32, #tpu.memory_space<smem>>
    %c1 = arith.constant 1 : index
    %37 = memref.load %arg5[%c1] : memref<8xf32, #tpu.memory_space<smem>>
    %38 = arith.mulf %23, %11 : vector<8x128xf32>
    %39 = vector.shape_cast %38 : vector<8x128xf32> to vector<1x8x128xf32>
    %cst_16 = arith.constant dense<0.000000e+00> : vector<1xf32>
    %40 = vector.multi_reduction <add>, %39, %cst_16 [1, 2] : vector<1x8x128xf32> to vector<1xf32>
    %41 = vector.shape_cast %40 : vector<1xf32> to vector<1x1x1xf32>
    %42 = vector.extract %41[0, 0, 0] : f32 from vector<1x1x1xf32>
    %43 = arith.addf %37, %42 : f32
    %c1_17 = arith.constant 1 : index
    %44 = memref.load %arg5[%c1_17] : memref<8xf32, #tpu.memory_space<smem>>
    memref.store %43, %arg5[%c1_17] : memref<8xf32, #tpu.memory_space<smem>>
    %c2 = arith.constant 2 : index
    %45 = memref.load %arg5[%c2] : memref<8xf32, #tpu.memory_space<smem>>
    %46 = vector.shape_cast %23 : vector<8x128xf32> to vector<1x8x128xf32>
    %cst_18 = arith.constant dense<0.000000e+00> : vector<1xf32>
    %47 = vector.multi_reduction <add>, %46, %cst_18 [1, 2] : vector<1x8x128xf32> to vector<1xf32>
    %48 = vector.shape_cast %47 : vector<1xf32> to vector<1x1x1xf32>
    %49 = vector.extract %48[0, 0, 0] : f32 from vector<1x1x1xf32>
    %50 = arith.addf %45, %49 : f32
    %c2_19 = arith.constant 2 : index
    %51 = memref.load %arg5[%c2_19] : memref<8xf32, #tpu.memory_space<smem>>
    memref.store %50, %arg5[%c2_19] : memref<8xf32, #tpu.memory_space<smem>>
    %c3 = arith.constant 3 : index
    %52 = memref.load %arg5[%c3] : memref<8xf32, #tpu.memory_space<smem>>
    %53 = vector.shape_cast %11 : vector<8x128xf32> to vector<1x8x128xf32>
    %cst_20 = arith.constant dense<0.000000e+00> : vector<1xf32>
    %54 = vector.multi_reduction <add>, %53, %cst_20 [1, 2] : vector<1x8x128xf32> to vector<1xf32>
    %55 = vector.shape_cast %54 : vector<1xf32> to vector<1x1x1xf32>
    %56 = vector.extract %55[0, 0, 0] : f32 from vector<1x1x1xf32>
    %57 = arith.addf %52, %56 : f32
    %c3_21 = arith.constant 3 : index
    %58 = memref.load %arg5[%c3_21] : memref<8xf32, #tpu.memory_space<smem>>
    memref.store %57, %arg5[%c3_21] : memref<8xf32, #tpu.memory_space<smem>>
    %c0_i32_22 = arith.constant 0 : i32
    %59 = arith.cmpi eq, %arg1, %c0_i32_22 : i32
    %60 = arith.extui %59 : i1 to i32
    %c0_i32_23 = arith.constant 0 : i32
    %61 = arith.cmpi ne, %60, %c0_i32_23 : i32
    scf.if %61 {
      %c1_26 = arith.constant 1 : index
      %67 = memref.load %arg5[%c1_26] : memref<8xf32, #tpu.memory_space<smem>>
      %cst_27 = arith.constant 1.000000e+00 : f32
      %68 = arith.addf %67, %cst_27 : f32
      %cst_28 = arith.constant 2.000000e+00 : f32
      %69 = arith.mulf %cst_28, %68 : f32
      %c2_29 = arith.constant 2 : index
      %70 = memref.load %arg5[%c2_29] : memref<8xf32, #tpu.memory_space<smem>>
      %c3_30 = arith.constant 3 : index
      %71 = memref.load %arg5[%c3_30] : memref<8xf32, #tpu.memory_space<smem>>
      %72 = arith.addf %70, %71 : f32
      %cst_31 = arith.constant 1.000000e+00 : f32
      %73 = arith.addf %72, %cst_31 : f32
      %74 = arith.divf %69, %73 : f32
      %c4 = arith.constant 4 : index
      %75 = memref.load %arg5[%c4] : memref<8xf32, #tpu.memory_space<smem>>
      %76 = arith.addf %75, %74 : f32
      %c4_32 = arith.constant 4 : index
      %77 = memref.load %arg5[%c4_32] : memref<8xf32, #tpu.memory_space<smem>>
      memref.store %76, %arg5[%c4_32] : memref<8xf32, #tpu.memory_space<smem>>
    } else {
    }
    %c1_i32 = arith.constant 1 : i32
    %62 = arith.cmpi eq, %arg0, %c1_i32 : i32
    %c0_i32_24 = arith.constant 0 : i32
    %63 = arith.cmpi eq, %arg1, %c0_i32_24 : i32
    %64 = arith.andi %62, %63 : i1
    %65 = arith.extui %64 : i1 to i32
    %c0_i32_25 = arith.constant 0 : i32
    %66 = arith.cmpi ne, %65, %c0_i32_25 : i32
    scf.if %66 {
      %c0_26 = arith.constant 0 : index
      %67 = memref.load %arg5[%c0_26] : memref<8xf32, #tpu.memory_space<smem>>
      %cst_27 = arith.constant 2.048000e+03 : f32
      %68 = arith.divf %67, %cst_27 : f32
      %c4 = arith.constant 4 : index
      %69 = memref.load %arg5[%c4] : memref<8xf32, #tpu.memory_space<smem>>
      %cst_28 = arith.constant 2.000000e+00 : f32
      %70 = arith.divf %69, %cst_28 : f32
      %cst_29 = arith.constant 1.000000e+00 : f32
      %71 = arith.subf %cst_29, %70 : f32
      %72 = arith.addf %71, %68 : f32
      %c0_30 = arith.constant 0 : index
      %c0_31 = arith.constant 0 : index
      %73 = memref.load %arg4[%c0_30, %c0_31] : memref<1x1xf32, #tpu.memory_space<smem>>
      memref.store %72, %arg4[%c0_30, %c0_31] : memref<1x1xf32, #tpu.memory_space<smem>>
    } else {
    }
    return
  }
  func.func @transform_0(%arg0: i32, %arg1: i32) -> (i32, i32, i32) {
    %c0_i32 = arith.constant 0 : i32
    %c0_i32_0 = arith.constant 0 : i32
    return %arg0, %arg1, %c0_i32 : i32, i32, i32
  }
  func.func @transform_1(%arg0: i32, %arg1: i32) -> (i32, i32, i32) {
    %c0_i32 = arith.constant 0 : i32
    %c0_i32_0 = arith.constant 0 : i32
    return %arg0, %arg1, %c0_i32 : i32, i32, i32
  }
  func.func @transform_2(%arg0: i32, %arg1: i32) -> (i32, i32) {
    %c0_i32 = arith.constant 0 : i32
    %c0_i32_0 = arith.constant 0 : i32
    %c0_i32_1 = arith.constant 0 : i32
    return %c0_i32, %c0_i32_0 : i32, i32
  }
}

</mosaic_0001>

<bundles_post_ra>
// kernel: tpu_custom_call.1
= control target key start
LH: loop header
LB: loop body
LE: loop exit
PB: predicated region body
PF: predicated region fallthrough
CT: control target
= control target key end

     0   :  { %7 = vsyncpa [#allocation4], 0  ;;  %s814_s0 = inlined_call_operand.hbm [shape: f32[2,8,128], index: 0, kind: input, shape index: {}]   ;;  %s815_s1 = inlined_call_operand.hbm [shape: f32[2,8,128], index: 1, kind: input, shape index: {}]   ;;  %s816_s2 = inlined_call_operand.hbm [shape: f32[1,1], index: 2, kind: output, shape index: {}]  }
   0x1   :  { %9 = vsyncpa [#allocation4 + $0x1], 0 }
   0x2   :  { %10 = vsyncpa [#allocation7], 0 }
   0x3   :  { %12 = vsyncpa [#allocation7 + $0x1], 0 }
   0x4   :  { %13 = vsyncpa [#allocation5], 0  ;;  %s684_s9 = smov 0   ;;  %s686_s10 = smov 0  }
   0x5   :  { %s688_s11 = smov 0   ;;  %s690_s12 = smov 0  }
   0x6   :  { %s692_s13 = smov 0   ;;  %s694_s14 = smov 0  }
   0x7 LB: > { %s424_s15 = sadd.s32 4294967295, %s663_s14   ;;  %s31_s16 = sadd.s32 1, %s659_s13  ;;  %s663_s14 = sphi %s694_s14, %s19_s14   ;;  %s659_s13 = sphi %s692_s13, %s825_s13   ;;  %s655_s12 = sphi %s690_s12, %s824_s12   ;;  %s651_s11 = sphi %s688_s11, %s823_s11   ;;  %s647_s10 = sphi %s686_s10, %s822_s10   ;;  %s643_s9 = sphi %s684_s9, %s821_s9  }
   0x8   : > { %p33_p0 = scmp.ge.s32.totalorder %s31_s16, 2  ;;  %s40_s17 = sadd.s32 1, %s651_s11 }
   0x9   : > { %p47_p1 = scmp.ne.s32.totalorder %s651_s11, %s647_s10  ;;  %p48_p2 = scmp.eq.s32.totalorder %s663_s14, 0 }
   0xa   : > { %s827_s16 = smov (%p33_p0, %s31_s16), 0  ;;  %p53_p4 = scmp.ne.s32.totalorder %s647_s10, %s643_s9 }
   0xb   : > { %p720_p3 = por %p48_p2, %p47_p1  ;;  %s35_s19 = ssub.s32 %s659_s13, %s827_s16 }
   0xc   : > { %p54_p5 = scmp.eq.s32.totalorder %s424_s15, 0  ;;  %p38_p6 = scmp.eq.s32.totalorder %s35_s19, 0 }
   0xd   : > { %p478_p8 = scmp.lt.s32.totalorder %s663_s14, 2  ;;  %s738_s22 = sand.u32 1, %s651_s11  }
   0xe   : > { %p729_p7 = por %p54_p5, %p53_p4  ;;  %s428_s23 = sshll.u32 %s659_s13, 7 }
   0xf   : > { %s735_s21 = scalar_select %p38_p6, %s651_s11, %s40_s17  }
  0x10   : > { %s427_s24 = sshll.u32 %s738_s22, 3  ;;  %s136_s27 = scalar_lea.hbm %s814_s0, %s428_s23 }
  0x11   : > { %s130_s28 = scalar_lea.vmem [#allocation3], %s427_s24  ;;  %p747_p9 = pnand %p478_p8, %p720_p3 }
  0x12   : > { %s138_s29 = sshll.u32 %s130_s28, 4  ;;  %p431_p10 = scmp.ge.s32.totalorder %s663_s14, 1  ;;  %s139_s29 = int_to_ptr.vmem [resolvable:$true] %s138_s29 }
  0x13   : > { %p162_p11 = scmp.lt.s32.totalorder %s663_s14, 3  ;;  %s127_s3 = scalar_lea.sflag [#allocation4], %s738_s22 }
  0x14   : > { %p541_p12 = pneg %p747_p9  ;;  %s552_s4 = scalar_lea.vmem %s139_s29, 128 }
  0x15   : > { %p553_p13 = scmp.ne.s32.totalorder %s139_s29, %s552_s4  ;;  %s665_s5 = smov [#allocation3]  }
  0x16   : > { %s557_s6 = sshll.u32 %s665_s5, 4  ;;  %s558_s6 = int_to_ptr.vmem [resolvable:$false] %s557_s6 }
  0x17   : > { %p555_p0 = pnand %p553_p13, %p541_p12  ;;  %s559_s7 = scalar_lea.vmem %s558_s6, 256 }
  0x18   : > { %p560_p2 = scmp.lt.s32.totalorder %s139_s29, %s558_s6  ;;  %p561_p3 = scmp.lt.s32.totalorder %s559_s7, %s552_s4 }
  0x19   : > { %p556_p1 = pneg %p555_p0 }
  0x1a   : > { %p562_p4 = por %p561_p3, %p560_p2 }
  0x1c   : > { %p563_p5 = pnand %p562_p4, %p556_p1 }
  0x1e   : > { %566 = shalt.err (!%p563_p5)
}
  0x1f   : > { %474 = dma.hbm_to_vmem [thread:$0]  (!%p747_p9), %s136_s27, 128, %s139_s29, %s127_s3  }
  0x20   : > { %p765_p6 = pnand %p431_p10, %p162_p11  ;;  %s155_s18 = scalar_lea.hbm %s815_s1, %s428_s23 }
  0x21   : > { %s149_s19 = scalar_lea.vmem [#allocation6], %s427_s24  ;;  %s146_s26 = scalar_lea.sflag [#allocation7], %s738_s22 }
  0x22   : > { %s157_s25 = sshll.u32 %s149_s19, 4  ;;  %s666_s27 = smov [#allocation6]   ;;  %s158_s25 = int_to_ptr.vmem [resolvable:$true] %s157_s25 }
  0x23   : > { %s580_s28 = scalar_lea.vmem %s158_s25, 128  ;;  %s585_s29 = sshll.u32 %s666_s27, 4  ;;  %s586_s29 = int_to_ptr.vmem [resolvable:$false] %s585_s29 }
  0x24   : > { %p581_p8 = scmp.ne.s32.totalorder %s158_s25, %s580_s28  ;;  %s587_s3 = scalar_lea.vmem %s586_s29, 256 }
  0x25   : > { %p588_p10 = scmp.lt.s32.totalorder %s158_s25, %s586_s29  ;;  %p589_p11 = scmp.lt.s32.totalorder %s587_s3, %s580_s28 }
  0x26   : > { %p583_p13 = pnand %p581_p8, %p541_p12 }
  0x27   : > { %p590_p1 = por %p589_p11, %p588_p10 }
  0x28   : > { %p584_p0 = pneg %p583_p13 }
  0x2a   : > { %p591_p2 = pnand %p590_p1, %p584_p0 }
  0x2c   : > { %594 = shalt.err (!%p591_p2)
}
  0x2d   : > { %477 = dma.hbm_to_vmem [thread:$0]  (!%p747_p9), %s155_s18, 128, %s158_s25, %s146_s26  }
  0x2e   : > { %166 = sbr.rel (%p765_p6) target bundleno = 388 (0x184), region = 28  ;;  %s168_s22 = sand.u32 (!%p765_p6), 1, %s647_s10  }
  0x2f   : > { %s432_s23 = sshll.u32 (!%p765_p6), %s168_s22, 3  ;;  %s169_s24 = scalar_lea.sflag (!%p765_p6), [#allocation4], %s168_s22 }
  0x30   : > { %s172_s4 = scalar_lea.vmem (!%p765_p6), [#allocation3], %s432_s23 }
  0x33   : > { %630 = dma.done.wait (%p729_p7), %s169_s24, 128  }
  0x34   : > { %632 = vsyncadd (%p729_p7), %s169_s24, 4294967168  ;;  %s178_s5 = scalar_lea.sflag [#allocation7], %s168_s22  ;;  %s181_s6 = scalar_lea.vmem [#allocation6], %s432_s23 }
  0x35   : > { %634 = dma.done.wait (%p729_p7), %s178_s5, 128  }
  0x36   : > { %636 = vsyncadd (%p729_p7), %s178_s5, 4294967168  ;;  %v221_v0 = vld [vmem:[%s172_s4] sm:$0xff]  ;;  %v222_v7 = vld [vmem:[%s181_s6] sm:$0xff]  ;;  %p202_p7 = scmp.eq.s32.totalorder %s655_s12, 0  ;;  %s667_s20 = smov 0.0  }
  0x37   : > { %v223_v1 = vand.u32 2147483647, %v221_v0  ;;  %v233_v9 = vmax.f32 %v221_v0, 0.0  ;;  %v234_v10 = vmul.f32 %v222_v7, %v221_v0  ;;  %vm230_vm0 = vcmp.ge.f32.partialorder %v221_v0, 0.0  ;;  %p317_p9 = scmp.eq.s32.totalorder %s655_s12, 1  ;;  %p479_p12 = scmp.eq.s32.totalorder %s424_s15, 1 }
  0x38   : > { %464 = sst [smem:[#allocation2]] (%p202_p7), %s667_s20  ;;  %s668_s6 = smov [#allocation8]  }
  0x39   : > { %v224_v2 = vsub.f32 0.0, %v223_v1  ;;  %v235_v16 = vsub.f32 %v233_v9, %v234_v10  ;;  %465 = sst [smem:[#allocation2 + $0x4]] (%p202_p7), %s667_s20 }
  0x3a   : > { %s246_s30 = sld [smem:[#allocation2]] }
  0x3b   : > { %v225_v3 = vmul.f32 1.442695, %v224_v2  ;;  %s441_s26 = sld [smem:[#allocation2 + $0x4]] }
  0x3d   : > { %531 = vpow2.f32 %v225_v3 }
  0x4a   : > { %v532_v4 = vpop.eup %531 }
  0x4b   : > { %v227_v5 = vadd.f32 1.0, %v532_v4  ;;  %v239_v6 = vmul.f32 -0.5, %v532_v4  ;;  %v242_v11 = vand.u32 2147483647, %v532_v4 }
  0x4d   : > { %533 = vrcp.f32 %v227_v5  ;;  %v240_v8 = vadd.f32 1.0, %v239_v6  ;;  %vm243_vm1 = vcmp.lt.f32.partialorder %v242_v11, 0.0004427343 }
  0x4e   : > { %535 = vlog2.f32 %v227_v5 }
  0x4f   : > { %v241_v13 = vmul.f32 %v532_v4, %v240_v8 }
  0x5a   : > { %v534_v12 = vpop.eup %533 }
  0x5b   : > { %v536_v14 = vpop.eup %535  ;;  %v231_v15 = vmul.f32 %v534_v12, %v532_v4 }
  0x5c   : > { %v238_v17 = vmul.f32 0.6931472, %v536_v14 }
  0x5d   : > { %v232_v18 = vsel %vm230_vm0, %v534_v12, %v231_v15 }
  0x5e   : > { %274 = vadd.xlane.f32.xlu1 %v232_v18  ;;  %v244_v19 = vsel %vm243_vm1, %v241_v13, %v238_v17  ;;  %v260_v21 = vmul.f32 %v232_v18, %v222_v7 }
  0x5f   : > { %v245_v20 = vadd.f32 %v244_v19, %v235_v16 }
  0x61   : > { %247 = vadd.xlane.f32.xlu0 %v245_v20 }
  0x62   : > { %287 = vadd.xlane.f32.xlu1 %v222_v7 }
  0x65   : > { %261 = vadd.xlane.f32.xlu0 %v260_v21 }
  0xe7   : > { %v275_v22 = vpop.xlane.xlu1 %274 }
  0xe8   : > { %v276_v23 = vrot.slane %v275_v22, 4 }
  0xea   : > { %v277_v24 = vadd.f32 %v276_v23, %v275_v22  ;;  %v248_v25 = vpop.xlane.xlu0 %247 }
  0xeb   : > { %v249_v26 = vrot.slane %v248_v25, 4  ;;  %v288_v27 = vpop.xlane.xlu1 %287 }
  0xec   : > { %v289_v28 = vrot.slane %v288_v27, 4  ;;  %v278_v30 = vrot.slane %v277_v24, 2 }
  0xed   : > { %v250_v29 = vadd.f32 %v249_v26, %v248_v25 }
  0xee   : > { %v290_v31 = vadd.f32 %v289_v28, %v288_v27  ;;  %v262_v32 = vpop.xlane.xlu0 %261  ;;  %v279_v38 = vadd.f32 %v278_v30, %v277_v24 }
  0xef   : > { %v251_v33 = vrot.slane %v250_v29, 2  ;;  %v263_v34 = vrot.slane %v262_v32, 4 }
  0xf0   : > { %v291_v35 = vrot.slane %v290_v31, 2  ;;  %v280_v44 = vrot.slane %v279_v38, 1 }
  0xf1   : > { %v264_v36 = vadd.f32 %v263_v34, %v262_v32  ;;  %v252_v37 = vadd.f32 %v251_v33, %v250_v29 }
  0xf2   : > { %v292_v39 = vadd.f32 %v291_v35, %v290_v31  ;;  %v281_v48 = vadd.f32 %v280_v44, %v279_v38 }
  0xf3   : > { %v265_v40 = vrot.slane %v264_v36, 2  ;;  %v253_v41 = vrot.slane %v252_v37, 1 }
  0xf4   : > { %v293_v46 = vrot.slane %v292_v39, 1 }
  0xf5   : > { %v266_v42 = vadd.f32 %v265_v40, %v264_v36  ;;  %v254_v43 = vadd.f32 %v253_v41, %v252_v37 }
  0xf6   : > { %v294_v49 = vadd.f32 %v293_v46, %v292_v39 }
  0xf7   : > { %450 = vpush %v254_v43  ;;  %v267_v45 = vrot.slane %v266_v42, 1 }
  0xf9   : > { %v268_v47 = vadd.f32 %v267_v45, %v266_v42 }
  0xfb   : > { %452 = vpush %v268_v47 }
  0xfc   : > { %454 = vpush %v281_v48 }
  0xfd   : > { %456 = vpush %v294_v49 }
 0x128   : > { %s451_s7 = spop %450 }
 0x129   : > { %s256_s8 = sadd.f32 %s451_s7, %s246_s30 }
 0x12b   : > { %258 = sst [smem:[#allocation2]] %s256_s8  ;;  %s325_s24 = smul.f32 0.00048828125, %s256_s8 }
 0x12c   : > { %s453_s9 = spop %452 }
 0x12d   : > { %s455_s17 = spop %454  ;;  %272 = sst [smem:[#allocation2 + $0x1]] %s453_s9 }
 0x12e   : > { %s457_s18 = spop %456  ;;  %285 = sst [smem:[#allocation2 + $0x2]] %s455_s17 }
 0x12f   : > { %298 = sst [smem:[#allocation2 + $0x3]] %s457_s18 }
 0x130   : > { %s307_s19 = sadd.f32 %s457_s18, %s455_s17 }
 0x131   : > { %s303_s28 = sadd.f32 1.0, %s453_s9 }
 0x132   : > { %s308_s25 = sadd.f32 1.0, %s307_s19 }
 0x133   : > { %s304_s27 = smul.f32 2.0, %s303_s28 }
 0x134   : > { %v309_v50 = vstv %s308_s25 }
 0x135   : > { %537 = vrcp.f32 %v309_v50 }
 0x142   : > { %v538_v51 = vpop.eup %537 }
 0x143   : > { %458 = vpush %v538_v51 }
 0x174   : > { %s459_s29 = spop %458 }
 0x175   : > { %s312_s3 = smul.f32 %s459_s29, %s304_s27 }
 0x177   : > { %s314_s22 = sadd.f32 %s441_s26, %s312_s3 }
 0x179   : > { %316 = sst [smem:[#allocation2 + $0x4]] %s314_s22  ;;  %s329_s23 = smul.f32 0.5, %s314_s22 }
 0x17b   : > { %s330_s4 = ssub.f32 1.0, %s329_s23 }
 0x17d   : > { %s331_s5 = sadd.f32 %s330_s4, %s325_s24 }
 0x17f   : > { %466 = sst [smem:[#allocation8]] (%p317_p9), %s331_s5 }
 0x180   : > { %468 = dma.smem_to_hbm (%p479_p12), %s668_s6, 16, %s816_s2, [#allocation5]  }
 0x181   : > { %638 = dma.done.wait (%p479_p12), [#allocation5], 16  }
 0x182   : > { %640 = vsyncadd (%p479_p12), [#allocation5], 4294967280 }
 0x183   : > { %347 = sfence }
 0x184 PF: > { %s19_s14 = sadd.s32 1, %s663_s14   ;;  %s821_s9 = smov %s647_s10 }
 0x185   : > { %p16_p3 = scmp.ge.s32.totalorder %s19_s14, 4   ;;  %s822_s10 = smov %s651_s11 }
 0x186   : > { %s823_s11 = smov %s735_s21  ;;  %s824_s12 = smov %s659_s13 }
 0x187   : > { %s825_s13 = smov %s827_s16  ;;  %18 = sbr.rel (!%p16_p3) target bundleno = 7 (0x7), region = 105 }
 0x18c   :  { %353 = vsyncpa [#allocation4], 1 }
 0x18d   :  { %355 = vsyncpa [#allocation4 + $0x1], 1 }
 0x18e   :  { %356 = vsyncpa [#allocation7], 1 }
 0x18f   :  { %358 = vsyncpa [#allocation7 + $0x1], 1 }
 0x190   :  { %359 = vsyncpa [#allocation5], 1 }
 0x191   :  { %361 = vsyncpa [#allocation5 + $0x1], 1 }

</bundles_post_ra>
